<compile_context>
chip_gen: v7x
topology: tpu7x:2x2x1
jax: 0.10.0
libtpu: 0.0.40
codegen_flags: <defaults>
</compile_context>

<pallas_src>
import functools
import math

import jax
import jax.numpy as jnp
from jax.experimental import pallas as pl
from jax.experimental.pallas import tpu as pltpu


_VMEM_BUDGET = 40 << 20          # total buffer budget: fits v7x (64 MiB) & v5e/v6e (128 MiB)
_TARGET_TILE_BYTES = 1 << 20     # ~1 MiB per streamed buffer (85%+ of HBM roofline)
_BLOCKDIAG_MAX_CN = 512          # past this the block-diag dot's wasted flops start to bite


def _round_down(x, m):
    return max(m, (x // m) * m)


def _pick_row_tile(n_rows, base, const_bytes, per_row_bytes, stream_row_bytes):
    """Row tile: ~_TARGET_TILE_BYTES per streamed buffer, multiple of `base`,
    within the VMEM budget, and (when possible) >= 2 grid steps so the
    "parallel" row axis can be sharded across both v7x TensorCores."""
    tr = _round_down(max(base, _TARGET_TILE_BYTES // stream_row_bytes), base)
    tr = min(tr, pl.cdiv(n_rows, base) * base)
    while tr > base and const_bytes + tr * per_row_bytes > _VMEM_BUDGET:
        tr = _round_down(tr // 2, base)
    while tr > base and pl.cdiv(n_rows, tr) < 2:
        tr = _round_down(tr // 2, base)
    return tr


def _vmem_limit(est_bytes):
    # Never below the largest per-chip scoped default (32 MiB); est + 25% + 4 MiB
    # headroom stays < v7x's 64 MiB physical because _VMEM_BUDGET caps est at 40 MiB.
    return int(max(est_bytes + est_bytes // 4 + (4 << 20), 32 << 20))


def _blockdiag_kernel(bd_ref, x_ref, o_ref):
    """One (TILE_ROWS, C*N) slab of batch rows: out = rows @ diag(M_0^T..M_{C-1}^T).

    bd_ref : VMEM (C*N, C*N)       block-diagonal operator (resident, 1 buffer)
    x_ref  : VMEM (TILE_ROWS, C*N) input rows  (streamed)
    o_ref  : VMEM (TILE_ROWS, C*N) output rows (streamed, lane-dense)
    """
    o_ref[...] = jnp.dot(
        x_ref[...], bd_ref[...], preferred_element_type=jnp.float32
    ).astype(o_ref.dtype)


def _two_dot_kernel(scale_ref, vinv_t_ref, v_t_ref, x_ref, o_ref):
    """One (TILE_ROWS, N) slab of flattened (batch, channel) rows.

    scale_ref  : VMEM (TILE_ROWS, N)  periodic per-row scale L[row % C] (resident)
    vinv_t_ref : VMEM (N, N)          Vinv^T (resident)
    v_t_ref    : VMEM (N, N)          V^T    (resident)
    x_ref      : VMEM (TILE_ROWS, N)  input rows  (streamed)
    o_ref      : VMEM (TILE_ROWS, N)  output rows (streamed)
    """
    coef = jnp.dot(x_ref[...], vinv_t_ref[...], preferred_element_type=jnp.float32)
    scaled = coef * scale_ref[...]
    o_ref[...] = jnp.dot(
        scaled, v_t_ref[...], preferred_element_type=jnp.float32
    ).astype(o_ref.dtype)


@jax.jit
def stacked_fractional_forward(x, w, V, Vinv, s0, s1):
    """StackedFractional.forward.  x: (..., C, N) with C = s1.shape[0], N = w.shape[0]."""
    *batch_dims, C, N = x.shape
    B = math.prod(batch_dims)
    dtype = jnp.float32

    s = (s0 + s1).astype(dtype)                               # (C,)
    # NOTE: w must be > 0 for non-integer s (w**s is NaN otherwise, same as torch.pow).
    L = jnp.power(w.astype(dtype)[None, :], s[:, None])       # (C, N)
    V32 = V.astype(dtype)
    Vinv32 = Vinv.astype(dtype)

    if N < 128 and C * N <= _BLOCKDIAG_MAX_CN:
        # ---------- small-N path: fold channels into the lane dimension ----------
        CN = C * N
        M = jnp.einsum('ij,cj,jk->cik', V32, L, Vinv32)       # (C, N, N)
        Mt = jnp.transpose(M, (0, 2, 1))                      # M_c^T
        eye_c = jnp.eye(C, dtype=dtype)
        # bd[c*N+j, d*N+i] = (c==d) * M[c, i, j]  -> out_flat = rows @ bd
        bd = (eye_c[:, None, :, None] * Mt[:, :, None, :]).reshape(CN, CN)

        rows = x.reshape(B, CN).astype(dtype)                 # metadata-only reshape
        base = 8                                              # sublane alignment
        const_bytes = CN * CN * 4                             # BD, single-buffered
        per_row_bytes = (2 + 2) * CN * 4                      # x + out, double-buffered
        tr = _pick_row_tile(B, base, const_bytes, per_row_bytes, CN * 4)
        r_pad = pl.cdiv(B, tr) * tr
        if r_pad != B:
            rows = jnp.pad(rows, ((0, r_pad - B), (0, 0)))

        out_rows = pl.pallas_call(
            _blockdiag_kernel,
            out_shape=jax.ShapeDtypeStruct((r_pad, CN), dtype),
            grid=(r_pad // tr,),
            in_specs=[
                pl.BlockSpec((CN, CN), lambda i: (0, 0),
                             pipeline_mode=pl.Buffered(1)),   # resident, 1 buffer
                pl.BlockSpec((tr, CN), lambda i: (i, 0)),     # streamed
            ],
            out_specs=pl.BlockSpec((tr, CN), lambda i: (i, 0)),
            compiler_params=pltpu.CompilerParams(
                dimension_semantics=("parallel",),
                vmem_limit_bytes=_vmem_limit(const_bytes + tr * per_row_bytes),
            ),
        )(bd, rows)
        return out_rows[:B].reshape(*batch_dims, C, N)

    # ---------- general path: two resident NxN dots + channel-periodic scale ----------
    R = B * C
    # Rows are (batch, channel) row-major with the channel fastest, so the per-row
    # channel pattern is periodic with period C -- this is what makes the tiled
    # scale table valid.  (Data layout is guaranteed by the (..., C, N) signature.)
    rows = x.reshape(R, N).astype(dtype)
    vinv_t = jnp.transpose(Vinv32)                            # (N, N)
    v_t = jnp.transpose(V32)                                  # (N, N)

    base = (C * 8) // math.gcd(C, 8)                          # lcm(C, 8)
    const_bytes = 2 * N * N * 4                               # Vinv^T + V^T, single-buffered
    per_row_bytes = (1 + 2 + 2) * N * 4                       # scale (1 buf) + x + out (2 each)
    tr = _pick_row_tile(R, base, const_bytes, per_row_bytes, N * 4)
    r_pad = pl.cdiv(R, tr) * tr
    if r_pad != R:
        rows = jnp.pad(rows, ((0, r_pad - R), (0, 0)))
    scale_rows = jnp.tile(L, (tr // C, 1))                    # (tr, N), period C

    out_rows = pl.pallas_call(
        _two_dot_kernel,
        out_shape=jax.ShapeDtypeStruct((r_pad, N), dtype),
        grid=(r_pad // tr,),
        in_specs=[
            pl.BlockSpec((tr, N), lambda i: (0, 0),
                         pipeline_mode=pl.Buffered(1)),       # scale  (resident)
            pl.BlockSpec((N, N), lambda i: (0, 0),
                         pipeline_mode=pl.Buffered(1)),       # Vinv^T (resident)
            pl.BlockSpec((N, N), lambda i: (0, 0),
                         pipeline_mode=pl.Buffered(1)),       # V^T    (resident)
            pl.BlockSpec((tr, N), lambda i: (i, 0)),          # x rows (streamed)
        ],
        out_specs=pl.BlockSpec((tr, N), lambda i: (i, 0)),    # out rows (streamed)
        compiler_params=pltpu.CompilerParams(
            dimension_semantics=("parallel",),
            vmem_limit_bytes=_vmem_limit(const_bytes + tr * per_row_bytes),
        ),
    )(scale_rows, vinv_t, v_t, rows)
    return out_rows[:R].reshape(*batch_dims, C, N)


def _reference_forward(x, w, V, Vinv, s0, s1):
    """Pure-JAX reference mirroring the PyTorch einsum chain."""
    s = s0 + s1                                               # (C,)
    L = jnp.power(w[None, :], s[:, None])                     # (C, N)
    M = jnp.einsum('ij,cj,jk->cik', V, L, Vinv)               # (C, N, N)
    return jnp.einsum('cik,...ck->...ci', M, x)


if __name__ == "__main__":
    B, C, N = 2, 4, 32                                        # batch, n_channels, n_dofs

    key = jax.random.PRNGKey(0)
    k_x, k_w, k_v, k_s0, k_s1 = jax.random.split(key, 5)

    # Deterministic synthetic parameters (shapes from __init__ / buffers):
    #   w: (N,) strictly positive eigenvalues, V: (N, N) orthogonal, Vinv = V^T,
    #   s0: scalar, s1: (C,)
    w = 1.0 + jax.random.uniform(k_w, (N,), dtype=jnp.float32)
    A = jax.random.normal(k_v, (N, N), dtype=jnp.float32)
    V, _ = jnp.linalg.qr(A)                                   # orthogonal, mimics init.orthogonal_
    V = V.astype(jnp.float32)
    Vinv = V.T
    s0 = 0.1 * jax.random.normal(k_s0, (), dtype=jnp.float32)
    s1 = 0.1 * jax.random.normal(k_s1, (C,), dtype=jnp.float32)
    x = jax.random.normal(k_x, (B, C, N), dtype=jnp.float32)

    # Small-N (block-diagonal, lane-dense) path.
    out = jax.block_until_ready(stacked_fractional_forward(x, w, V, Vinv, s0, s1))
    ref = _reference_forward(x, w, V, Vinv, s0, s1)
    assert out.shape == (B, C, N)
    assert jnp.allclose(out, ref, rtol=1e-4, atol=1e-4), (
        f"small-N path max abs err {jnp.max(jnp.abs(out - ref))}"
    )

    # Also exercise the general (N >= 128) two-dot path at a small size.
    N2 = 128
    w2 = 1.0 + jax.random.uniform(k_w, (N2,), dtype=jnp.float32)
    V2, _ = jnp.linalg.qr(jax.random.normal(k_v, (N2, N2), dtype=jnp.float32))
    V2 = V2.astype(jnp.float32)
    Vinv2 = V2.T
    x2 = jax.random.normal(k_x, (B, C, N2), dtype=jnp.float32)
    out2 = jax.block_until_ready(stacked_fractional_forward(x2, w2, V2, Vinv2, s0, s1))
    ref2 = _reference_forward(x2, w2, V2, Vinv2, s0, s1)
    assert out2.shape == (B, C, N2)
    assert jnp.allclose(out2, ref2, rtol=1e-4, atol=1e-3), (
        f"general path max abs err {jnp.max(jnp.abs(out2 - ref2))}"
    )

    print("KERNEL_OK")
</pallas_src>

<mosaic_0001>
module attributes {stable_mosaic.version = 11 : i64} {
  func.func @_blockdiag_kernel(%arg0: i32, %arg1: memref<128x128xf32, #tpu.memory_space<vmem>>, %arg2: memref<8x128xf32, #tpu.memory_space<vmem>>, %arg3: memref<8x128xf32, #tpu.memory_space<vmem>>) attributes {dimension_semantics = [#tpu.dimension_semantics<parallel>], iteration_bounds = array<i64: 1>, scalar_prefetch = 0 : i64, scratch_operands = 0 : i64, tpu.core_type = #tpu.core_type<tc>, window_params = [{pipeline_mode = #tpu.pipeline_mode<synchronous>, transform_indices = @transform_0, window_bounds = array<i64: 128, 128>}, {transform_indices = @transform_1, window_bounds = array<i64: 8, 128>}, {transform_indices = @transform_2, window_bounds = array<i64: 8, 128>}]} {
    %c0 = arith.constant 0 : index
    %c0_0 = arith.constant 0 : index
    %0 = vector.load %arg2[%c0, %c0_0] : memref<8x128xf32, #tpu.memory_space<vmem>>, vector<8x128xf32>
    %c0_1 = arith.constant 0 : index
    %c0_2 = arith.constant 0 : index
    %1 = vector.load %arg1[%c0_1, %c0_2] : memref<128x128xf32, #tpu.memory_space<vmem>>, vector<128x128xf32>
    %cst = arith.constant dense<0.000000e+00> : vector<8x128xf32>
    %2 = tpu.matmul %0, %1, %cst {dimension_numbers = #tpu.dot_dimension_numbers<[1], [0], [0], [1], [0, 0, 1, 1], [], []>} : vector<8x128xf32>, vector<128x128xf32>, vector<8x128xf32> -> vector<8x128xf32>
    %c0_3 = arith.constant 0 : index
    %c0_4 = arith.constant 0 : index
    %3 = vector.load %arg3[%c0_3, %c0_4] : memref<8x128xf32, #tpu.memory_space<vmem>>, vector<8x128xf32>
    tpu.vector_store %arg3[%c0_3, %c0_4], %2 {strides = array<i32>} : memref<8x128xf32, #tpu.memory_space<vmem>>, vector<8x128xf32>,
    return
  }
  func.func @transform_0(%arg0: i32) -> (i32, i32) {
    %c0_i32 = arith.constant 0 : i32
    %c0_i32_0 = arith.constant 0 : i32
    %c0_i32_1 = arith.constant 0 : i32
    return %c0_i32, %c0_i32_0 : i32, i32
  }
  func.func @transform_1(%arg0: i32) -> (i32, i32) {
    %c0_i32 = arith.constant 0 : i32
    %c0_i32_0 = arith.constant 0 : i32
    return %arg0, %c0_i32 : i32, i32
  }
  func.func @transform_2(%arg0: i32) -> (i32, i32) {
    %c0_i32 = arith.constant 0 : i32
    %c0_i32_0 = arith.constant 0 : i32
    return %arg0, %c0_i32 : i32, i32
  }
}

</mosaic_0001>

<bundles_post_ra>
// kernel: stacked_fractional_forward.1
= control target key start
LH: loop header
LB: loop body
LE: loop exit
PB: predicated region body
PF: predicated region fallthrough
CT: control target
= control target key end

     0   :  { %v182_v0 = vmov 0.0|0.0   ;;  %vm183_vm0 = vmmov 0   ;;  %v184_v4 = vmov 0.0   ;;  %s254_s0 = inlined_call_operand.vmem [shape: f32[128,128], index: 0, kind: input, shape index: {}]   ;;  %s255_s1 = inlined_call_operand.vmem [shape: f32[8,128], index: 1, kind: input, shape index: {}]   ;;  %s256_s2 = inlined_call_operand.vmem [shape: f32[8,128], index: 2, kind: output, shape index: {}]  }
   0x1   :  { %155 = vmatprep.subr.bf16.mxu0 %v182_v0  ;;  %v12_v1 = vld [vmem:[%s254_s0] sm:$0xff]  ;;  %v13_v2 = vld [vmem:[%s254_s0 + $0x8] sm:$0xff]  ;;  %v14_v3 = vld [vmem:[%s254_s0 + $0x10] sm:$0xff]  ;;  %152 = vmatprep.mubr.msk.f32.mxu0 %vm183_vm0, %v184_v4 }
   0x2   :  { %v156_v5 = vpack.c.bf16 %v13_v2, %v12_v1  ;;  %v15_v6 = vld [vmem:[%s254_s0 + $0x18] sm:$0xff]  ;;  %v16_v8 = vld [vmem:[%s254_s0 + $0x20] sm:$0xff]  ;;  %v17_v9 = vld [vmem:[%s254_s0 + $0x28] sm:$0xff] }
   0x3   :  { %v159_v7 = vpack.c.bf16 %v15_v6, %v14_v3  ;;  %v162_v10 = vpack.c.bf16 %v17_v9, %v16_v8  ;;  %v18_v11 = vld [vmem:[%s254_s0 + $0x30] sm:$0xff]  ;;  %v19_v12 = vld [vmem:[%s254_s0 + $0x38] sm:$0xff]  ;;  %v20_v14 = vld [vmem:[%s254_s0 + $0x40] sm:$0xff] }
   0x4   :  { %157 = vmatpush3.bf16.msra.mxu0 %v156_v5  ;;  %v165_v13 = vpack.c.bf16 %v19_v12, %v18_v11  ;;  %v21_v15 = vld [vmem:[%s254_s0 + $0x48] sm:$0xff]  ;;  %v22_v17 = vld [vmem:[%s254_s0 + $0x50] sm:$0xff]  ;;  %v23_v18 = vld [vmem:[%s254_s0 + $0x58] sm:$0xff] }
   0x5   :  { %158 = vmatprep.subr.bf16.mxu0 %v182_v0  ;;  %v168_v16 = vpack.c.bf16 %v21_v15, %v20_v14  ;;  %v171_v19 = vpack.c.bf16 %v23_v18, %v22_v17  ;;  %v24_v20 = vld [vmem:[%s254_s0 + $0x60] sm:$0xff]  ;;  %v25_v21 = vld [vmem:[%s254_s0 + $0x68] sm:$0xff]  ;;  %v26_v23 = vld [vmem:[%s254_s0 + $0x70] sm:$0xff] }
   0x6   :  { %v174_v22 = vpack.c.bf16 %v25_v21, %v24_v20  ;;  %v27_v24 = vld [vmem:[%s254_s0 + $0x78] sm:$0xff]  ;;  %v11_v26 = vld [vmem:[%s255_s1] sm:$0xff] }
   0x7   :  { %v177_v25 = vpack.c.bf16 %v27_v24, %v26_v23 }
   0x8   :  { %160 = vmatpush3.bf16.msra.mxu0 %v159_v7 }
   0x9   :  { %161 = vmatprep.subr.bf16.mxu0 %v182_v0 }
   0xc   :  { %163 = vmatpush3.bf16.msra.mxu0 %v162_v10 }
   0xd   :  { %164 = vmatprep.subr.bf16.mxu0 %v182_v0 }
  0x10   :  { %166 = vmatpush3.bf16.msra.mxu0 %v165_v13 }
  0x11   :  { %167 = vmatprep.subr.bf16.mxu0 %v182_v0 }
  0x14   :  { %169 = vmatpush3.bf16.msra.mxu0 %v168_v16 }
  0x15   :  { %170 = vmatprep.subr.bf16.mxu0 %v182_v0 }
  0x18   :  { %172 = vmatpush3.bf16.msra.mxu0 %v171_v19 }
  0x19   :  { %173 = vmatprep.subr.bf16.mxu0 %v182_v0 }
  0x1c   :  { %175 = vmatpush3.bf16.msra.mxu0 %v174_v22 }
  0x1d   :  { %176 = vmatprep.subr.bf16.mxu0 %v182_v0 }
  0x20   :  { %178 = vmatpush3.bf16.msra.mxu0 %v177_v25 }
  0x23   :  { %153 = vmatmul.mubr.f32.vlgmr.msra.gmra.mrb[0].mxu0 %v11_v26 }
  0xf6   :  { %v94_v27 = vpop.f32.mrb[0].mxu0 }
  0xf7   :  { %98 = vst [vmem:[%s256_s2] sm:$0xff] %v94_v27  ;;  %v154_v28 = vpop.f32.mrb[1].mxu0 }

</bundles_post_ra>
